<compile_context>
chip_gen: v7x
topology: tpu7x:2x2x1
jax: 0.10.0
libtpu: 0.0.40
codegen_flags: <defaults>
</compile_context>

<pallas_src>
import functools

import jax
import jax.numpy as jnp
from jax.experimental import pallas as pl
from jax.experimental.pallas import tpu as pltpu


def _round_up(x: int, m: int) -> int:
    return (x + m - 1) // m * m


def _decoder_kernel(x_ref, w1_ref, w2_ref, w3_ref, b_ref, out_ref):
    """Fused 3-layer MLP for one batch tile. All operands resident in VMEM.

    MXU matmuls take low-precision (e.g. bf16) inputs and accumulate in f32;
    bias-add and ReLU run in f32 on the VPU.  `b_ref` holds the three biases
    concatenated along the lane axis: [b1 (hid_p) | b2 (hid_p) | b3 (out_p)].
    """
    hid_p = w1_ref.shape[1]
    cdt = w1_ref.dtype  # compute dtype for MXU inputs (bf16 or f32)

    # Static, 128-aligned slices of the concatenated bias operand (views).
    b1 = b_ref[:, :hid_p]
    b2 = b_ref[:, hid_p:2 * hid_p]
    b3 = b_ref[:, 2 * hid_p:]

    x = x_ref[...]  # already in compute dtype (cast fused into the pad outside)

    # Layer 1: Linear(latent -> hidden) + ReLU
    h = jnp.dot(x, w1_ref[...], preferred_element_type=jnp.float32) + b1
    h = jnp.maximum(h, 0.0)

    # Layer 2: Linear(hidden -> hidden) + ReLU
    h = jnp.dot(h.astype(cdt), w2_ref[...], preferred_element_type=jnp.float32) + b2
    h = jnp.maximum(h, 0.0)

    # Layer 3: Linear(hidden -> output), no activation
    o = jnp.dot(h.astype(cdt), w3_ref[...], preferred_element_type=jnp.float32) + b3
    out_ref[...] = o.astype(out_ref.dtype)


def prepare_decoder_params(w1, b1, w2, b2, w3, b3, *, compute_dtype=jnp.bfloat16):
    """One-time weight preparation (pad feature dims to 128 lanes, cast, pack biases).

    Weights are (in_features, out_features); biases are (out_features,).
    Zero-padding is semantics-preserving: padded input features multiply zero
    weight rows, padded output features get zero weight/bias and are sliced
    off after the kernel.  Call this ONCE and reuse the result across calls.
    """
    latent_dim, hidden_dim = w1.shape
    output_dim = w3.shape[1]

    lat_p = _round_up(latent_dim, 128)
    hid_p = _round_up(hidden_dim, 128)
    out_p = _round_up(output_dim, 128)

    w1p = jnp.pad(w1, ((0, lat_p - latent_dim), (0, hid_p - hidden_dim))).astype(compute_dtype)
    w2p = jnp.pad(w2, ((0, hid_p - hidden_dim), (0, hid_p - hidden_dim))).astype(compute_dtype)
    w3p = jnp.pad(w3, ((0, hid_p - hidden_dim), (0, out_p - output_dim))).astype(compute_dtype)

    bcat = jnp.concatenate([
        jnp.pad(b1, (0, hid_p - hidden_dim)),
        jnp.pad(b2, (0, hid_p - hidden_dim)),
        jnp.pad(b3, (0, out_p - output_dim)),
    ]).astype(jnp.float32).reshape(1, -1)

    w1p, w2p, w3p, bcat = jax.block_until_ready((w1p, w2p, w3p, bcat))
    return w1p, w2p, w3p, bcat


@functools.partial(jax.jit, static_argnames=("output_dim", "batch_tile", "out_dtype"))
def decoder_forward(x, w1p, w2p, w3p, bcat, *, output_dim, batch_tile=256, out_dtype=None):
    """x: (B, latent_dim).  Prepared params from prepare_decoder_params.

    Returns (B, output_dim) in `out_dtype` (defaults to x.dtype, i.e. f32 to
    match the PyTorch module; pass jnp.bfloat16 to halve output writeback).
    """
    B, latent_dim = x.shape
    lat_p, hid_p = w1p.shape
    out_p = w3p.shape[1]
    cdt = w1p.dtype
    out_dtype = x.dtype if out_dtype is None else out_dtype

    # ---- batch tiling ------------------------------------------------------
    # Pad batch to a multiple of 16 (bf16 sublane packing).  Pick the tile so
    # that, whenever possible, the grid has >= 2 steps: the batch axis is
    # "parallel", so >=2 steps lets v7x shard it across its two TensorCores.
    b_pad0 = _round_up(max(B, 1), 16)
    if b_pad0 > 16:
        tile = max(16, min(_round_up(batch_tile, 16), _round_up(b_pad0 // 2, 16)))
    else:
        tile = 16
    b_pad = _round_up(b_pad0, tile)
    grid = (b_pad // tile,)

    # Pad + cast x in one fused XLA pass; kernel streams the compute dtype.
    xp = jnp.pad(x, ((0, b_pad - B), (0, lat_p - latent_dim))).astype(cdt)

    # ---- explicit scoped-VMEM budget (matters on v5e 16 MiB / v7x 32 MiB defaults)
    w_isz = jnp.dtype(cdt).itemsize
    o_isz = jnp.dtype(out_dtype).itemsize
    block_bytes = (
        2 * tile * lat_p * w_isz                                   # x (double-buffered)
        + 2 * tile * out_p * o_isz                                 # out (double-buffered)
        + 2 * (lat_p * hid_p + hid_p * hid_p + hid_p * out_p) * w_isz  # weights
        + 2 * (2 * hid_p + out_p) * 4                              # packed biases
        + 3 * tile * hid_p * 4 + tile * out_p * 4                  # f32 intermediates
    )
    vmem_limit = int(min(64 * 2**20, 2 * block_bytes + 8 * 2**20))

    out_padded = pl.pallas_call(
        _decoder_kernel,
        out_shape=jax.ShapeDtypeStruct((b_pad, out_p), out_dtype),
        grid_spec=pl.GridSpec(
            grid=grid,
            in_specs=[
                # x: tile over batch, full (padded) feature dim
                pl.BlockSpec((tile, lat_p), lambda i: (i, 0)),
                # weights / packed biases: full blocks, constant index maps
                pl.BlockSpec((lat_p, hid_p), lambda i: (0, 0)),
                pl.BlockSpec((hid_p, hid_p), lambda i: (0, 0)),
                pl.BlockSpec((hid_p, out_p), lambda i: (0, 0)),
                pl.BlockSpec((1, 2 * hid_p + out_p), lambda i: (0, 0)),
            ],
            # lane-dense output (last dim is a multiple of 128) -> unmasked vst
            out_specs=pl.BlockSpec((tile, out_p), lambda i: (i, 0)),
        ),
        compiler_params=pltpu.CompilerParams(
            dimension_semantics=("parallel",),
            vmem_limit_bytes=vmem_limit,
        ),
    )(xp, w1p, w2p, w3p, bcat)

    return out_padded[:B, :output_dim]


def init_linear_params(key, in_features, out_features):
    """Init mimicking torch.nn.Linear default (uniform +-1/sqrt(in)).

    Weight returned transposed to (in_features, out_features); bias as (out,).
    """
    k_w, k_b = jax.random.split(key)
    bound = 1.0 / jnp.sqrt(jnp.float32(in_features))
    w = jax.random.uniform(k_w, (in_features, out_features), jnp.float32, -bound, bound)
    b = jax.random.uniform(k_b, (out_features,), jnp.float32, -bound, bound)
    return w, b


def reference_forward(x, w1, b1, w2, b2, w3, b3):
    """Plain-JAX f32 reference matching the PyTorch forward."""
    h = jax.nn.relu(x @ w1 + b1)
    h = jax.nn.relu(h @ w2 + b2)
    return h @ w3 + b3


if __name__ == "__main__":
    # Small shapes consistent with the module: latent=8, hidden=32, output=64, batch=16.
    latent_dim, hidden_dim, output_dim = 8, 32, 64
    batch = 16

    key = jax.random.PRNGKey(0)
    kx, k1, k2, k3 = jax.random.split(key, 4)

    x = jax.random.normal(kx, (batch, latent_dim), jnp.float32)
    w1, b1 = init_linear_params(k1, latent_dim, hidden_dim)
    w2, b2 = init_linear_params(k2, hidden_dim, hidden_dim)
    w3, b3 = init_linear_params(k3, hidden_dim, output_dim)

    ref = reference_forward(x, w1, b1, w2, b2, w3, b3)

    # Exact f32 compute path: tight check against the reference.
    params_f32 = prepare_decoder_params(w1, b1, w2, b2, w3, b3, compute_dtype=jnp.float32)
    out_f32 = jax.block_until_ready(decoder_forward(x, *params_f32, output_dim=output_dim))
    assert out_f32.shape == (batch, output_dim)
    assert jnp.allclose(out_f32, ref, atol=1e-5, rtol=1e-5), "f32 mismatch vs reference"

    # Default bf16-MXU-input / f32-accumulate path: loosened tolerance.
    params = prepare_decoder_params(w1, b1, w2, b2, w3, b3)
    out = jax.block_until_ready(decoder_forward(x, *params, output_dim=output_dim))
    assert out.shape == (batch, output_dim)
    assert jnp.allclose(out, ref, atol=5e-2, rtol=5e-2), "bf16 mismatch vs reference"

    # Larger batch to exercise batch padding and a multi-step (>=2) grid.
    x2 = jax.random.normal(kx, (40, latent_dim), jnp.float32)
    ref2 = reference_forward(x2, w1, b1, w2, b2, w3, b3)
    out2 = jax.block_until_ready(decoder_forward(x2, *params, output_dim=output_dim))
    assert out2.shape == (40, output_dim)
    assert jnp.allclose(out2, ref2, atol=5e-2, rtol=5e-2), "bf16 multi-tile mismatch vs reference"

    print("KERNEL_OK")
</pallas_src>

<mosaic_0001>
module attributes {stable_mosaic.version = 11 : i64} {
  func.func @_decoder_kernel(%arg0: i32, %arg1: memref<16x128xf32, #tpu.memory_space<vmem>>, %arg2: memref<128x128xf32, #tpu.memory_space<vmem>>, %arg3: memref<128x128xf32, #tpu.memory_space<vmem>>, %arg4: memref<128x128xf32, #tpu.memory_space<vmem>>, %arg5: memref<1x384xf32, #tpu.memory_space<vmem>>, %arg6: memref<16x128xf32, #tpu.memory_space<vmem>>) attributes {dimension_semantics = [#tpu.dimension_semantics<parallel>], iteration_bounds = array<i64: 1>, scalar_prefetch = 0 : i64, scratch_operands = 0 : i64, tpu.core_type = #tpu.core_type<tc>, window_params = [{transform_indices = @transform_0, window_bounds = array<i64: 16, 128>}, {pipeline_mode = #tpu.pipeline_mode<synchronous>, transform_indices = @transform_1, window_bounds = array<i64: 128, 128>}, {pipeline_mode = #tpu.pipeline_mode<synchronous>, transform_indices = @transform_2, window_bounds = array<i64: 128, 128>}, {pipeline_mode = #tpu.pipeline_mode<synchronous>, transform_indices = @transform_3, window_bounds = array<i64: 128, 128>}, {pipeline_mode = #tpu.pipeline_mode<synchronous>, transform_indices = @transform_4, window_bounds = array<i64: 1, 384>}, {transform_indices = @transform_5, window_bounds = array<i64: 16, 128>}]} {
    %c0 = arith.constant 0 : index
    %c0_0 = arith.constant 0 : index
    %0 = vector.load %arg5[%c0, %c0_0] : memref<1x384xf32, #tpu.memory_space<vmem>>, vector<1x128xf32>
    %c0_1 = arith.constant 0 : index
    %c128 = arith.constant 128 : index
    %1 = vector.load %arg5[%c0_1, %c128] : memref<1x384xf32, #tpu.memory_space<vmem>>, vector<1x128xf32>
    %c0_2 = arith.constant 0 : index
    %c256 = arith.constant 256 : index
    %2 = vector.load %arg5[%c0_2, %c256] : memref<1x384xf32, #tpu.memory_space<vmem>>, vector<1x128xf32>
    %c0_3 = arith.constant 0 : index
    %c0_4 = arith.constant 0 : index
    %3 = vector.load %arg1[%c0_3, %c0_4] : memref<16x128xf32, #tpu.memory_space<vmem>>, vector<16x128xf32>
    %c0_5 = arith.constant 0 : index
    %c0_6 = arith.constant 0 : index
    %4 = vector.load %arg2[%c0_5, %c0_6] : memref<128x128xf32, #tpu.memory_space<vmem>>, vector<128x128xf32>
    %cst = arith.constant dense<0.000000e+00> : vector<16x128xf32>
    %5 = tpu.matmul %3, %4, %cst {dimension_numbers = #tpu.dot_dimension_numbers<[1], [0], [0], [1], [0, 0, 1, 1], [], []>} : vector<16x128xf32>, vector<128x128xf32>, vector<16x128xf32> -> vector<16x128xf32>
    %6 = vector.broadcast %0 : vector<1x128xf32> to vector<16x128xf32>
    %7 = arith.addf %5, %6 : vector<16x128xf32>
    %cst_7 = arith.constant 0.000000e+00 : f32
    %8 = vector.broadcast %cst_7 : f32 to vector<16x128xf32>
    %9 = arith.maximumf %7, %8 : vector<16x128xf32>
    %c0_8 = arith.constant 0 : index
    %c0_9 = arith.constant 0 : index
    %10 = vector.load %arg3[%c0_8, %c0_9] : memref<128x128xf32, #tpu.memory_space<vmem>>, vector<128x128xf32>
    %cst_10 = arith.constant dense<0.000000e+00> : vector<16x128xf32>
    %11 = tpu.matmul %9, %10, %cst_10 {dimension_numbers = #tpu.dot_dimension_numbers<[1], [0], [0], [1], [0, 0, 1, 1], [], []>} : vector<16x128xf32>, vector<128x128xf32>, vector<16x128xf32> -> vector<16x128xf32>
    %12 = vector.broadcast %1 : vector<1x128xf32> to vector<16x128xf32>
    %13 = arith.addf %11, %12 : vector<16x128xf32>
    %cst_11 = arith.constant 0.000000e+00 : f32
    %14 = vector.broadcast %cst_11 : f32 to vector<16x128xf32>
    %15 = arith.maximumf %13, %14 : vector<16x128xf32>
    %c0_12 = arith.constant 0 : index
    %c0_13 = arith.constant 0 : index
    %16 = vector.load %arg4[%c0_12, %c0_13] : memref<128x128xf32, #tpu.memory_space<vmem>>, vector<128x128xf32>
    %cst_14 = arith.constant dense<0.000000e+00> : vector<16x128xf32>
    %17 = tpu.matmul %15, %16, %cst_14 {dimension_numbers = #tpu.dot_dimension_numbers<[1], [0], [0], [1], [0, 0, 1, 1], [], []>} : vector<16x128xf32>, vector<128x128xf32>, vector<16x128xf32> -> vector<16x128xf32>
    %18 = vector.broadcast %2 : vector<1x128xf32> to vector<16x128xf32>
    %19 = arith.addf %17, %18 : vector<16x128xf32>
    %c0_15 = arith.constant 0 : index
    %c0_16 = arith.constant 0 : index
    %20 = vector.load %arg6[%c0_15, %c0_16] : memref<16x128xf32, #tpu.memory_space<vmem>>, vector<16x128xf32>
    tpu.vector_store %arg6[%c0_15, %c0_16], %19 {strides = array<i32>} : memref<16x128xf32, #tpu.memory_space<vmem>>, vector<16x128xf32>,
    return
  }
  func.func @transform_0(%arg0: i32) -> (i32, i32) {
    %c0_i32 = arith.constant 0 : i32
    %c0_i32_0 = arith.constant 0 : i32
    return %arg0, %c0_i32 : i32, i32
  }
  func.func @transform_1(%arg0: i32) -> (i32, i32) {
    %c0_i32 = arith.constant 0 : i32
    %c0_i32_0 = arith.constant 0 : i32
    %c0_i32_1 = arith.constant 0 : i32
    return %c0_i32, %c0_i32_0 : i32, i32
  }
  func.func @transform_2(%arg0: i32) -> (i32, i32) {
    %c0_i32 = arith.constant 0 : i32
    %c0_i32_0 = arith.constant 0 : i32
    %c0_i32_1 = arith.constant 0 : i32
    return %c0_i32, %c0_i32_0 : i32, i32
  }
  func.func @transform_3(%arg0: i32) -> (i32, i32) {
    %c0_i32 = arith.constant 0 : i32
    %c0_i32_0 = arith.constant 0 : i32
    %c0_i32_1 = arith.constant 0 : i32
    return %c0_i32, %c0_i32_0 : i32, i32
  }
  func.func @transform_4(%arg0: i32) -> (i32, i32) {
    %c0_i32 = arith.constant 0 : i32
    %c0_i32_0 = arith.constant 0 : i32
    %c0_i32_1 = arith.constant 0 : i32
    return %c0_i32, %c0_i32_0 : i32, i32
  }
  func.func @transform_5(%arg0: i32) -> (i32, i32) {
    %c0_i32 = arith.constant 0 : i32
    %c0_i32_0 = arith.constant 0 : i32
    return %arg0, %c0_i32 : i32, i32
  }
}

</mosaic_0001>

<bundles_post_ra>
// kernel: decoder_forward.1
= control target key start
LH: loop header
LB: loop body
LE: loop exit
PB: predicated region body
PF: predicated region fallthrough
CT: control target
= control target key end

     0   :  { %10 = vsyncpa [#allocation3], 0  ;;  %s858_s0 = inlined_call_operand.vmem [shape: f32[16,128], index: 0, kind: input, shape index: {}]   ;;  %s859_s1 = inlined_call_operand.hbm [shape: f32[128,128], index: 1, kind: input, shape index: {}]   ;;  %s860_s2 = inlined_call_operand.hbm [shape: f32[128,128], index: 2, kind: input, shape index: {}]   ;;  %s861_s3 = inlined_call_operand.hbm [shape: f32[128,128], index: 3, kind: input, shape index: {}]   ;;  %s862_s4 = inlined_call_operand.vmem [shape: f32[1,384], index: 4, kind: input, shape index: {}]   ;;  %s863_s5 = inlined_call_operand.hbm [shape: f32[16,128], index: 5, kind: output, shape index: {}]  }
   0x1   :  { %11 = vsyncpa [#allocation6], 0 }
   0x2   :  { %12 = vsyncpa [#allocation4], 0  ;;  %s740_s18 = smov [#allocation5]   ;;  %s741_s20 = smov [#allocation2]  }
   0x3   :  { %s32_s19 = sshll.u32 %s740_s18, 4  ;;  %s20_s21 = sshll.u32 %s741_s20, 4  ;;  %s33_s19 = int_to_ptr.vmem [resolvable:$true] %s32_s19  ;;  %s776_s21 = int_to_ptr.vmem [resolvable:$true] %s20_s21 }
   0x4   :  { %s646_s24 = scalar_lea.hbm %s860_s2, 2048 }
   0x5   :  { %p647_p0 = scmp.ne.s32.totalorder %s860_s2, %s646_s24  ;;  %p650_p1 = scmp.lt.u32.totalorder %s646_s24, %s860_s2 }
   0x7   :  { %p652_p2 = pnand %p650_p1, %p647_p0 }
   0x9   :  { %655 = shalt.err (!%p652_p2)
}
   0xa   :  { %s656_s29 = scalar_lea.vmem %s33_s19, 2048  ;;  %p661_p4 = scmp.lt.s32.totalorder %s33_s19, %s33_s19 }
   0xb   :  { %p657_p3 = scmp.ne.s32.totalorder %s33_s19, %s656_s29  ;;  %p662_p5 = scmp.lt.s32.totalorder %s656_s29, %s656_s29 }
   0xd   :  { %p663_p6 = por %p662_p5, %p661_p4 }
   0xf   :  { %p664_p7 = pnand %p663_p6, %p657_p3 }
  0x11   :  { %667 = shalt.err (!%p664_p7)
}
  0x12   :  { %s742_s30 = smov 128   ;;  %s743_s6 = smov 8  }
  0x13   :  { %38 = dma.hbm_to_vmem [thread:$0]  %s860_s2, 2048, %s33_s19, [#allocation6], %s742_s30, %s742_s30, %s743_s6  }
  0x14   :  { %s668_s11 = scalar_lea.hbm %s859_s1, 2048 }
  0x15   :  { %p669_p8 = scmp.ne.s32.totalorder %s859_s1, %s668_s11  ;;  %p672_p9 = scmp.lt.u32.totalorder %s668_s11, %s859_s1 }
  0x17   :  { %p674_p10 = pnand %p672_p9, %p669_p8 }
  0x19   :  { %677 = shalt.err (!%p674_p10)
}
  0x1a   :  { %s678_s16 = scalar_lea.vmem %s776_s21, 2048  ;;  %p683_p12 = scmp.lt.s32.totalorder %s776_s21, %s776_s21 }
  0x1b   :  { %p679_p11 = scmp.ne.s32.totalorder %s776_s21, %s678_s16  ;;  %p684_p13 = scmp.lt.s32.totalorder %s678_s16, %s678_s16 }
  0x1d   :  { %p685_p0 = por %p684_p13, %p683_p12 }
  0x1f   :  { %p686_p1 = pnand %p685_p0, %p679_p11 }
  0x21   :  { %689 = shalt.err (!%p686_p1)
}
  0x22   :  { %26 = dma.hbm_to_vmem [thread:$0]  %s859_s1, 2048, %s776_s21, [#allocation3], %s742_s30, %s742_s30, %s743_s6  }
  0x23   :  { %s744_s18 = smov [#allocation7]   ;;  %s690_s23 = scalar_lea.hbm %s861_s3, 2048 }
  0x24   :  { %s44_s19 = sshll.u32 %s744_s18, 4  ;;  %p691_p2 = scmp.ne.s32.totalorder %s861_s3, %s690_s23  ;;  %s45_s19 = int_to_ptr.vmem [resolvable:$true] %s44_s19 }
  0x25   :  { %p694_p3 = scmp.lt.u32.totalorder %s690_s23, %s861_s3 }
  0x27   :  { %p696_p4 = pnand %p694_p3, %p691_p2 }
  0x29   :  { %699 = shalt.err (!%p696_p4)
}
  0x2a   :  { %s700_s28 = scalar_lea.vmem %s45_s19, 2048  ;;  %p705_p6 = scmp.lt.s32.totalorder %s45_s19, %s45_s19 }
  0x2b   :  { %p701_p5 = scmp.ne.s32.totalorder %s45_s19, %s700_s28  ;;  %p706_p7 = scmp.lt.s32.totalorder %s700_s28, %s700_s28 }
  0x2d   :  { %p707_p8 = por %p706_p7, %p705_p6 }
  0x2f   :  { %p708_p9 = pnand %p707_p8, %p701_p5 }
  0x31   :  { %711 = shalt.err (!%p708_p9)
}
  0x32   :  { %50 = dma.hbm_to_vmem [thread:$0]  %s861_s3, 2048, %s45_s19, [#allocation6], %s742_s30, %s742_s30, %s743_s6  }
  0x33   :  { %734 = dma.done.wait [#allocation3], 2048  }
  0x34   :  { %735 = vsyncadd [#allocation3], 4294965248 }
  0x35   :  { %736 = dma.done.wait [#allocation6], 4096  }
  0x36   :  { %737 = vsyncadd [#allocation6], 4294963200  ;;  %v67_v0 = vld [vmem:[#allocation2] sm:$0xff]  ;;  %v68_v1 = vld [vmem:[#allocation2 + $0x8] sm:$0xff]  ;;  %s745_s14 = smov [#allocation8]  }
  0x37   :  { %v69_v2 = vld [vmem:[#allocation2 + $0x10] sm:$0xff]  ;;  %v544_v3 = vpack.c.bf16 %v68_v1, %v67_v0  ;;  %v70_v4 = vld [vmem:[#allocation2 + $0x18] sm:$0xff]  ;;  %v71_v6 = vld [vmem:[#allocation2 + $0x20] sm:$0xff]  ;;  %s369_s15 = sshll.u32 %s745_s14, 4  ;;  %s370_s15 = int_to_ptr.vmem [resolvable:$true] %s369_s15 }
  0x38   :  { %v548_v5 = vpack.c.bf16 %v70_v4, %v69_v2  ;;  %v72_v7 = vld [vmem:[#allocation2 + $0x28] sm:$0xff]  ;;  %v73_v9 = vld [vmem:[#allocation2 + $0x30] sm:$0xff]  ;;  %v74_v10 = vld [vmem:[#allocation2 + $0x38] sm:$0xff]  ;;  %s712_s16 = scalar_lea.vmem %s370_s15, 256  ;;  %p717_p11 = scmp.lt.s32.totalorder %s370_s15, %s370_s15 }
  0x39   :  { %545 = vmatprep.subr.bf16.mxu0 %v544_v3  ;;  %v552_v8 = vpack.c.bf16 %v72_v7, %v71_v6  ;;  %v65_v11 = vld [vmem:[%s858_s0] sm:$0xff]  ;;  %v167_v13 = vld [vmem:[#allocation5 + $0x8] sm:$0xff]  ;;  %v168_v14 = vld [vmem:[#allocation5 + $0x10] sm:$0xff]  ;;  %v556_v20 = vpack.c.bf16 %v74_v10, %v73_v9  ;;  %p713_p10 = scmp.ne.s32.totalorder %s370_s15, %s712_s16  ;;  %p718_p12 = scmp.lt.s32.totalorder %s712_s16, %s712_s16 }
  0x3a   :  { %547 = vmatpush3.bf16.msra.mxu0 %v544_v3  ;;  %471 = vmatprep.mubr.f32.mxu0 %v65_v11  ;;  %v166_v12 = vld [vmem:[#allocation5] sm:$0xff]  ;;  %v169_v16 = vld [vmem:[#allocation5 + $0x18] sm:$0xff]  ;;  %v171_v19 = vld [vmem:[#allocation5 + $0x28] sm:$0xff] }
  0x3b   :  { %549 = vmatprep.subr.bf16.mxu0 %v548_v5  ;;  %v576_v15 = vpack.c.bf16 %v167_v13, %v166_v12  ;;  %v580_v17 = vpack.c.bf16 %v169_v16, %v168_v14  ;;  %v170_v18 = vld [vmem:[#allocation5 + $0x20] sm:$0xff]  ;;  %v76_v22 = vld [vmem:[#allocation2 + $0x48] sm:$0xff]  ;;  %v172_v24 = vld [vmem:[#allocation5 + $0x30] sm:$0xff]  ;;  %p719_p13 = por %p718_p12, %p717_p11 }
  0x3c   :  { %v75_v21 = vld [vmem:[#allocation2 + $0x40] sm:$0xff]  ;;  %v584_v23 = vpack.c.bf16 %v171_v19, %v170_v18  ;;  %v173_v25 = vld [vmem:[#allocation5 + $0x38] sm:$0xff]  ;;  %v77_v27 = vld [vmem:[#allocation2 + $0x50] sm:$0xff] }
  0x3d   :  { %577 = vmatprep.subr.bf16.mxu1 %v576_v15  ;;  %v560_v26 = vpack.c.bf16 %v76_v22, %v75_v21  ;;  %v78_v28 = vld [vmem:[#allocation2 + $0x58] sm:$0xff]  ;;  %v588_v29 = vpack.c.bf16 %v173_v25, %v172_v24  ;;  %v174_v30 = vld [vmem:[#allocation5 + $0x40] sm:$0xff]  ;;  %v175_v31 = vld [vmem:[#allocation5 + $0x48] sm:$0xff]  ;;  %p720_p0 = pnand %p719_p13, %p713_p10 }
  0x3e   :  { %551 = vmatpush3.bf16.msra.mxu0 %v548_v5  ;;  %579 = vmatpush3.bf16.msra.mxu1 %v576_v15  ;;  %v564_v32 = vpack.c.bf16 %v78_v28, %v77_v27  ;;  %v79_v33 = vld [vmem:[#allocation2 + $0x60] sm:$0xff]  ;;  %v80_v34 = vld [vmem:[#allocation2 + $0x68] sm:$0xff]  ;;  %v592_v35 = vpack.c.bf16 %v175_v31, %v174_v30  ;;  %v176_v36 = vld [vmem:[#allocation5 + $0x50] sm:$0xff] }
  0x3f   :  { %553 = vmatprep.subr.bf16.mxu0 %v552_v8  ;;  %581 = vmatprep.subr.bf16.mxu1 %v580_v17  ;;  %v177_v37 = vld [vmem:[#allocation5 + $0x58] sm:$0xff]  ;;  %v568_v38 = vpack.c.bf16 %v80_v34, %v79_v33  ;;  %v81_v39 = vld [vmem:[#allocation2 + $0x70] sm:$0xff]  ;;  %v178_v42 = vld [vmem:[#allocation5 + $0x60] sm:$0xff] }
  0x40   :  { %v82_v40 = vld [vmem:[#allocation2 + $0x78] sm:$0xff]  ;;  %v596_v41 = vpack.c.bf16 %v177_v37, %v176_v36  ;;  %v179_v43 = vld [vmem:[#allocation5 + $0x68] sm:$0xff]  ;;  %v180_v47 = vld [vmem:[#allocation5 + $0x70] sm:$0xff] }
  0x41   :  { %v572_v44 = vpack.c.bf16 %v82_v40, %v81_v39  ;;  %v600_v45 = vpack.c.bf16 %v179_v43, %v178_v42  ;;  %v66_v46 = vld [vmem:[%s858_s0 + $0x8] sm:$0xff]  ;;  %v181_v48 = vld [vmem:[#allocation5 + $0x78] sm:$0xff]  ;;  %v265_v50 = vld [vmem:[#allocation7] sm:$0xff] }
  0x42   :  { %555 = vmatpush3.bf16.msra.mxu0 %v552_v8  ;;  %583 = vmatpush3.bf16.msra.mxu1 %v580_v17  ;;  %v604_v49 = vpack.c.bf16 %v181_v48, %v180_v47  ;;  %v266_v51 = vld [vmem:[#allocation7 + $0x8] sm:$0xff]  ;;  %v267_v52 = vld [vmem:[#allocation7 + $0x10] sm:$0xff]  ;;  %v268_v54 = vld [vmem:[#allocation7 + $0x18] sm:$0xff] }
  0x43   :  { %557 = vmatprep.subr.bf16.mxu0 %v556_v20  ;;  %585 = vmatprep.subr.bf16.mxu1 %v584_v23  ;;  %v608_v53 = vpack.c.bf16 %v266_v51, %v265_v50  ;;  %v612_v55 = vpack.c.bf16 %v268_v54, %v267_v52  ;;  %v269_v56 = vld [vmem:[#allocation7 + $0x20] sm:$0xff]  ;;  %v270_v57 = vld [vmem:[#allocation7 + $0x28] sm:$0xff]  ;;  %v271_v59 = vld [vmem:[#allocation7 + $0x30] sm:$0xff] }
  0x44   :  { %v616_v58 = vpack.c.bf16 %v270_v57, %v269_v56  ;;  %v272_v60 = vld [vmem:[#allocation7 + $0x38] sm:$0xff]  ;;  %v273_v62 = vld [vmem:[#allocation7 + $0x40] sm:$0xff]  ;;  %v274_v63 = vld [vmem:[#allocation7 + $0x48] sm:$0xff] }
  0x45   :  { %v620_v61 = vpack.c.bf16 %v272_v60, %v271_v59  ;;  %v624_v0 = vpack.c.bf16 %v274_v63, %v273_v62  ;;  %v275_v1 = vld [vmem:[#allocation7 + $0x50] sm:$0xff]  ;;  %v276_v2 = vld [vmem:[#allocation7 + $0x58] sm:$0xff]  ;;  %v277_v4 = vld [vmem:[#allocation7 + $0x60] sm:$0xff] }
  0x46   :  { %559 = vmatpush3.bf16.msra.mxu0 %v556_v20  ;;  %587 = vmatpush3.bf16.msra.mxu1 %v584_v23  ;;  %v628_v3 = vpack.c.bf16 %v276_v2, %v275_v1  ;;  %v278_v5 = vld [vmem:[#allocation7 + $0x68] sm:$0xff]  ;;  %v382_v7 = vld [vmem:[%s862_s4] ss:$0 sm:$0xff]  ;;  %v279_v14 = vld [vmem:[#allocation7 + $0x70] sm:$0xff] }
  0x47   :  { %561 = vmatprep.subr.bf16.mxu0 %v560_v26  ;;  %589 = vmatprep.subr.bf16.mxu1 %v588_v29  ;;  %v632_v6 = vpack.c.bf16 %v278_v5, %v277_v4  ;;  %v280_v15 = vld [vmem:[#allocation7 + $0x78] sm:$0xff]  ;;  %v383_v17 = vld [vmem:[%s862_s4 + $0x1] ss:$0 sm:$0xff]  ;;  %v384_v24 = vld [vmem:[%s862_s4 + $0x2] ss:$0 sm:$0xff] }
  0x48   :  { %v636_v16 = vpack.c.bf16 %v280_v15, %v279_v14 }
  0x4a   :  { %563 = vmatpush3.bf16.msra.mxu0 %v560_v26  ;;  %591 = vmatpush3.bf16.msra.mxu1 %v588_v29 }
  0x4b   :  { %565 = vmatprep.subr.bf16.mxu0 %v564_v32  ;;  %593 = vmatprep.subr.bf16.mxu1 %v592_v35 }
  0x4e   :  { %567 = vmatpush3.bf16.msra.mxu0 %v564_v32  ;;  %595 = vmatpush3.bf16.msra.mxu1 %v592_v35 }
  0x4f   :  { %569 = vmatprep.subr.bf16.mxu0 %v568_v38  ;;  %597 = vmatprep.subr.bf16.mxu1 %v596_v41 }
  0x52   :  { %571 = vmatpush3.bf16.msra.mxu0 %v568_v38  ;;  %599 = vmatpush3.bf16.msra.mxu1 %v596_v41 }
  0x53   :  { %573 = vmatprep.subr.bf16.mxu0 %v572_v44  ;;  %601 = vmatprep.subr.bf16.mxu1 %v600_v45 }
  0x56   :  { %575 = vmatpush3.bf16.msra.mxu0 %v572_v44  ;;  %603 = vmatpush3.bf16.msra.mxu1 %v600_v45 }
  0x57   :  { %605 = vmatprep.subr.bf16.mxu1 %v604_v49  ;;  %609 = vmatprep.subr.bf16.mxu0 %v608_v53 }
  0x59   :  { %472 = vmatmul.mubr.f32.vlgmr.msra.gmra.mrb[0].mxu0 %v66_v46 }
  0x5a   :  { %607 = vmatpush3.bf16.msra.mxu1 %v604_v49  ;;  %611 = vmatpush3.bf16.msra.mxu0 %v608_v53 }
  0x5b   :  { %613 = vmatprep.subr.bf16.mxu0 %v612_v55 }
  0x5e   :  { %615 = vmatpush3.bf16.msra.mxu0 %v612_v55 }
  0x5f   :  { %617 = vmatprep.subr.bf16.mxu0 %v616_v58 }
  0x62   :  { %619 = vmatpush3.bf16.msra.mxu0 %v616_v58 }
  0x63   :  { %621 = vmatprep.subr.bf16.mxu0 %v620_v61 }
  0x66   :  { %623 = vmatpush3.bf16.msra.mxu0 %v620_v61 }
  0x67   :  { %625 = vmatprep.subr.bf16.mxu0 %v624_v0 }
  0x6a   :  { %627 = vmatpush3.bf16.msra.mxu0 %v624_v0 }
  0x6b   :  { %629 = vmatprep.subr.bf16.mxu0 %v628_v3 }
  0x6e   :  { %631 = vmatpush3.bf16.msra.mxu0 %v628_v3 }
  0x6f   :  { %633 = vmatprep.subr.bf16.mxu0 %v632_v6 }
  0x72   :  { %635 = vmatpush3.bf16.msra.mxu0 %v632_v6 }
  0x73   :  { %637 = vmatprep.subr.bf16.mxu0 %v636_v16 }
  0x76   :  { %639 = vmatpush3.bf16.msra.mxu0 %v636_v16 }
 0x12c   :  { %v473_v8 = vpop.f32.mrb[0].mxu0 }
 0x12d   :  { %v161_v9 = vadd.f32 %v473_v8, %v382_v7  ;;  %v155_v10 = vpop.f32.mrb[1].mxu0 }
 0x12e   :  { %v156_v11 = vadd.f32 %v382_v7, %v155_v10 }
 0x12f   :  { %v165_v13 = vmax.f32 %v161_v9, 0.0 }
 0x130   :  { %v164_v12 = vmax.f32 %v156_v11, 0.0 }
 0x132   :  { %506 = vmatprep.mubr.f32.mxu1 %v164_v12 }
 0x133   :  { %507 = vmatmul.mubr.f32.vlgmr.msra.gmra.mrb[0].mxu1 %v165_v13 }
 0x206   :  { %v508_v18 = vpop.f32.mrb[0].mxu1 }
 0x207   :  { %v260_v19 = vadd.f32 %v508_v18, %v383_v17  ;;  %v254_v20 = vpop.f32.mrb[1].mxu1 }
 0x208   :  { %v255_v21 = vadd.f32 %v383_v17, %v254_v20 }
 0x209   :  { %v264_v23 = vmax.f32 %v260_v19, 0.0 }
 0x20a   :  { %v263_v22 = vmax.f32 %v255_v21, 0.0 }
 0x20c   :  { %541 = vmatprep.mubr.f32.mxu0 %v263_v22 }
 0x20d   :  { %542 = vmatmul.mubr.f32.vlgmr.msra.gmra.mrb[2].mxu0 %v264_v23 }
 0x2e0   :  { %v543_v25 = vpop.f32.mrb[2].mxu0 }
 0x2e1   :  { %v359_v26 = vadd.f32 %v543_v25, %v384_v24  ;;  %v353_v27 = vpop.f32.mrb[3].mxu0 }
 0x2e2   :  { %v354_v28 = vadd.f32 %v384_v24, %v353_v27 }
 0x2e3   :  { %363 = vst [vmem:[#allocation8 + $0x8] sm:$0xff] %v359_v26 }
 0x2e4   :  { %362 = vst [vmem:[#allocation8] sm:$0xff] %v354_v28 }
 0x2e5   :  { %723 = shalt.err (!%p720_p0)
}
 0x2e6   :  { %s724_s4 = scalar_lea.hbm %s863_s5, 256 }
 0x2e7   :  { %p725_p1 = scmp.ne.s32.totalorder %s863_s5, %s724_s4  ;;  %p728_p2 = scmp.lt.u32.totalorder %s724_s4, %s863_s5 }
 0x2e9   :  { %p730_p3 = pnand %p728_p2, %p725_p1 }
 0x2eb   :  { %733 = shalt.err (!%p730_p3)
}
 0x2ec   :  { %375 = dma.vmem_to_hbm [thread:$0]  %s370_s15, 256, %s863_s5, [#allocation4], %s742_s30, %s742_s30, %s743_s6  }
 0x2ed   :  { %738 = dma.done.wait [#allocation4], 256  }
 0x2ee   :  { %739 = vsyncadd [#allocation4], 4294967040 }
 0x2ef   :  { %379 = vsyncpa [#allocation3], 1 }
 0x2f0   :  { %380 = vsyncpa [#allocation6], 1 }
 0x2f1   :  { %381 = vsyncpa [#allocation4], 1 }

</bundles_post_ra>
